<compile_context>
chip_gen: v7x
topology: tpu7x:2x2x1
jax: 0.10.0
libtpu: 0.0.40
codegen_flags: <defaults>
</compile_context>

<pallas_src>
import functools

import jax
import jax.numpy as jnp
from jax.experimental import pallas as pl
from jax.experimental.pallas import tpu as pltpu


# ----------------------------------------------------------------------------
# Helpers
# ----------------------------------------------------------------------------

def _activation_fn(name):
    if name is None:
        return lambda x: x
    if name == "relu":
        return lambda x: jnp.maximum(x, 0.0)
    if name == "silu":
        return lambda x: x * jax.nn.sigmoid(x)
    raise NotImplementedError(name)


def _round_up(x, m):
    return ((x + m - 1) // m) * m


_LANE_MULT = 256        # full MXU lane width on v6e/v7x; harmless on v5e
_MAX_BLOCK_BATCH = 1024  # keeps the unrolled [H, bb] f32/bf16 chain in vregs


def _device_info():
    """(is_v7x, tensorcores_per_chip) — trace-time query, robust fallback."""
    try:
        kind = jax.devices()[0].device_kind.lower()
    except Exception:  # pragma: no cover - CPU/interpret fallback
        return False, 1
    is_v7 = ("v7" in kind) or ("7x" in kind)
    return is_v7, (2 if is_v7 else 1)


def _pick_block_batch(n, n_cores):
    """Lane-aligned batch tile: as few grid steps as possible.

    Single-TC chips (v5e/v6e): grid of 1 when N fits (the grid is a serial
    loop, extra steps are pure per-step overhead at this arithmetic intensity).
    v7x (2 TCs): one big step per core once N is large enough to split.
    """
    bb = _round_up(n, _LANE_MULT)                       # 1 step if it fits
    if n_cores > 1 and n > _MAX_BLOCK_BATCH:            # split across TCs
        bb = min(bb, _round_up(pl.cdiv(n, n_cores), _LANE_MULT))
    return max(_LANE_MULT, min(bb, _MAX_BLOCK_BATCH))


def _grid_semantics(num_steps, is_v7):
    if num_steps <= 1:
        return ("arbitrary",)
    # Plain "parallel" has near-zero codegen effect; only CORE_PARALLEL
    # actually shards the grid axis across v7x's two TensorCores.
    if is_v7 and hasattr(pltpu, "CORE_PARALLEL"):
        return (pltpu.CORE_PARALLEL,)
    return ("parallel",)


# ----------------------------------------------------------------------------
# Kernel
# ----------------------------------------------------------------------------

def _make_mlp_kernel(n_extra_hidden, activation, output_activation, mm_dtype):
    act = _activation_fn(activation)
    out_act = _activation_fn(output_activation)
    # lhs [O, K] x rhs [bb, K] -> [O, bb]: batch lands on lanes without any
    # wrapper-side transpose of x (the orientation flip happens in the MXU).
    contract_last = (((1,), (1,)), ((), ()))

    def body(x_ref, w0_ref, b0_ref, wh_ref, bh_ref, wo_ref, bo_ref, o_ref):
        # x_ref: [bb, dim_in] in native layout; cast to the MXU dtype in-kernel.
        x = x_ref[...].astype(mm_dtype)
        h = jax.lax.dot_general(
            w0_ref[...].astype(mm_dtype), x,
            dimension_numbers=contract_last,
            preferred_element_type=jnp.float32)           # [H, bb] f32
        h = act(h + b0_ref[...])                          # f32 bias + activation
        for i in range(n_extra_hidden):                   # static unroll
            h = jnp.dot(wh_ref[i].astype(mm_dtype), h.astype(mm_dtype),
                        preferred_element_type=jnp.float32)
            h = act(h + bh_ref[i])
        y = jnp.dot(wo_ref[...].astype(mm_dtype), h.astype(mm_dtype),
                    preferred_element_type=jnp.float32)   # [dim_out, bb]
        o_ref[...] = out_act(y + bo_ref[...]).astype(o_ref.dtype)

    if n_extra_hidden > 0:
        return body

    def body_no_hidden(x_ref, w0_ref, b0_ref, wo_ref, bo_ref, o_ref):
        return body(x_ref, w0_ref, b0_ref, None, None, wo_ref, bo_ref, o_ref)

    return body_no_hidden


# ----------------------------------------------------------------------------
# Wrapper
# ----------------------------------------------------------------------------

def mlp_pallas(x, params, *, activation="relu", output_activation=None,
               n_hidden_layers=2, matmul_dtype=jnp.bfloat16,
               transpose_output=True):
    """Fused MLP forward.

    x: [N, dim_in]
    params (nn.Linear layout, weight [out, in], bias [out]):
      w0 [H, dim_in], b0 [H],
      wh [>=max(1, L-1), H, H], bh [>=max(1, L-1), H],
      wo [dim_out, H], bo [dim_out]
    matmul_dtype=jnp.float32 gives full f32 parity (slower MXU passes).
    transpose_output=False returns [dim_out, N] and skips one HBM round trip
    over the output.
    """
    w0, b0, wo, bo = params["w0"], params["b0"], params["wo"], params["bo"]
    n, dim_in = x.shape
    n_neurons = w0.shape[0]
    dim_out = wo.shape[0]
    n_extra_hidden = n_hidden_layers - 1

    is_v7, n_cores = _device_info()
    bb = _pick_block_batch(n, n_cores)
    num_steps = pl.cdiv(n, bb)   # ragged last tile is masked by Pallas

    # Tiny bias reshapes only (no HBM pass over x or the output in the wrapper).
    b0c = b0.astype(jnp.float32).reshape(n_neurons, 1)
    boc = bo.astype(jnp.float32).reshape(dim_out, 1)

    operands = [x, w0, b0c]
    in_specs = [
        pl.BlockSpec((bb, dim_in), lambda i: (i, 0)),          # x tile (contiguous)
        pl.BlockSpec((n_neurons, dim_in), lambda i: (0, 0)),   # w0 (fetched once)
        pl.BlockSpec((n_neurons, 1), lambda i: (0, 0)),        # b0
    ]
    if n_extra_hidden > 0:
        whc = params["wh"][:n_extra_hidden]
        bhc = params["bh"][:n_extra_hidden].astype(jnp.float32).reshape(
            n_extra_hidden, n_neurons, 1)
        operands += [whc, bhc]
        in_specs += [
            pl.BlockSpec((n_extra_hidden, n_neurons, n_neurons),
                         lambda i: (0, 0, 0)),                 # wh stack
            pl.BlockSpec((n_extra_hidden, n_neurons, 1),
                         lambda i: (0, 0, 0)),                 # bh stack
        ]
    operands += [wo, boc]
    in_specs += [
        pl.BlockSpec((dim_out, n_neurons), lambda i: (0, 0)),  # wo
        pl.BlockSpec((dim_out, 1), lambda i: (0, 0)),          # bo
    ]

    kernel = _make_mlp_kernel(n_extra_hidden, activation, output_activation,
                              matmul_dtype)

    outT = pl.pallas_call(
        kernel,
        out_shape=jax.ShapeDtypeStruct((dim_out, n), x.dtype),
        grid=(num_steps,),
        in_specs=in_specs,
        out_specs=pl.BlockSpec((dim_out, bb), lambda i: (0, i)),  # lane-dense y^T
        compiler_params=pltpu.CompilerParams(
            dimension_semantics=_grid_semantics(num_steps, is_v7)),
    )(*operands)

    if not transpose_output:
        return outT                   # [dim_out, N], no extra HBM round trip
    return jnp.transpose(outT)        # [N, dim_out] (module-native layout)


# ----------------------------------------------------------------------------
# Reference + init
# ----------------------------------------------------------------------------

def init_mlp_params(key, dim_in, dim_out, n_neurons, n_hidden_layers):
    """Deterministic synthetic init, nn.Linear layout: weight [out, in], bias [out]."""
    ks = jax.random.split(key, 6)
    n_extra = max(1, n_hidden_layers - 1)  # keep >=1 so arrays are well-formed
    s0 = 1.0 / jnp.sqrt(dim_in)
    sh = 1.0 / jnp.sqrt(n_neurons)
    return {
        "w0": jax.random.uniform(ks[0], (n_neurons, dim_in),
                                 minval=-s0, maxval=s0, dtype=jnp.float32),
        "b0": jax.random.uniform(ks[1], (n_neurons,),
                                 minval=-s0, maxval=s0, dtype=jnp.float32),
        "wh": jax.random.uniform(ks[2], (n_extra, n_neurons, n_neurons),
                                 minval=-sh, maxval=sh, dtype=jnp.float32),
        "bh": jax.random.uniform(ks[3], (n_extra, n_neurons),
                                 minval=-sh, maxval=sh, dtype=jnp.float32),
        "wo": jax.random.uniform(ks[4], (dim_out, n_neurons),
                                 minval=-sh, maxval=sh, dtype=jnp.float32),
        "bo": jax.random.uniform(ks[5], (dim_out,),
                                 minval=-sh, maxval=sh, dtype=jnp.float32),
    }


def mlp_reference(x, params, *, activation="relu", output_activation=None,
                  n_hidden_layers=2):
    """Pure-JAX f32 reference (matches PyTorch nn.Linear: y = x @ W.T + b)."""
    act = _activation_fn(activation)
    out_act = _activation_fn(output_activation)
    h = act(x @ params["w0"].T + params["b0"])
    for i in range(n_hidden_layers - 1):
        h = act(h @ params["wh"][i].T + params["bh"][i])
    y = h @ params["wo"].T + params["bo"]
    return out_act(y)


# ----------------------------------------------------------------------------
# Main
# ----------------------------------------------------------------------------

if __name__ == "__main__":
    # Module hyperparameters (consistent with MLP.__init__):
    dim_in, dim_out = 4, 3
    n_neurons = 32
    n_hidden_layers = 2
    activation = "relu"
    output_activation = None  # identity

    # Non-multiple of 256 -> exercises the ragged (masked) tile; small enough
    # that every generation runs a single grid step (no per-step overhead).
    batch = 1000

    key = jax.random.PRNGKey(0)
    kx, kp = jax.random.split(key)
    x = jax.random.normal(kx, (batch, dim_in), dtype=jnp.float32)
    params = init_mlp_params(kp, dim_in, dim_out, n_neurons, n_hidden_layers)

    run = jax.jit(functools.partial(
        mlp_pallas, activation=activation,
        output_activation=output_activation,
        n_hidden_layers=n_hidden_layers))
    out = jax.block_until_ready(run(x, params))

    ref = mlp_reference(x, params, activation=activation,
                        output_activation=output_activation,
                        n_hidden_layers=n_hidden_layers)
    assert out.shape == (batch, dim_out)
    # bf16 matmul operands (f32 accumulation) -> looser tolerance than pure f32.
    assert jnp.allclose(out, ref, atol=3e-2, rtol=3e-2), \
        float(jnp.max(jnp.abs(out - ref)))

    # Also cover the single-hidden-layer variant (wh/bh operands skipped).
    run1 = jax.jit(functools.partial(
        mlp_pallas, activation=activation,
        output_activation=output_activation, n_hidden_layers=1))
    out1 = jax.block_until_ready(run1(x, params))
    ref1 = mlp_reference(x, params, activation=activation,
                         output_activation=output_activation,
                         n_hidden_layers=1)
    assert jnp.allclose(out1, ref1, atol=3e-2, rtol=3e-2), \
        float(jnp.max(jnp.abs(out1 - ref1)))

    print("KERNEL_OK")
</pallas_src>

<mosaic_0001>
module attributes {stable_mosaic.version = 11 : i64} {
  func.func @body(%arg0: i32, %arg1: memref<1024x4xf32, #tpu.memory_space<vmem>>, %arg2: memref<32x4xf32, #tpu.memory_space<vmem>>, %arg3: memref<32x1xf32, #tpu.memory_space<vmem>>, %arg4: memref<1x32x32xf32, #tpu.memory_space<vmem>>, %arg5: memref<1x32x1xf32, #tpu.memory_space<vmem>>, %arg6: memref<3x32xf32, #tpu.memory_space<vmem>>, %arg7: memref<3x1xf32, #tpu.memory_space<vmem>>, %arg8: memref<3x1024xf32, #tpu.memory_space<vmem>>) attributes {dimension_semantics = [#tpu.dimension_semantics<arbitrary>], iteration_bounds = array<i64: 1>, scalar_prefetch = 0 : i64, scratch_operands = 0 : i64, tpu.core_type = #tpu.core_type<tc>, window_params = [{transform_indices = @transform_0, window_bounds = array<i64: 1024, 4>}, {pipeline_mode = #tpu.pipeline_mode<synchronous>, transform_indices = @transform_1, window_bounds = array<i64: 32, 4>}, {pipeline_mode = #tpu.pipeline_mode<synchronous>, transform_indices = @transform_2, window_bounds = array<i64: 32, 1>}, {pipeline_mode = #tpu.pipeline_mode<synchronous>, transform_indices = @transform_3, window_bounds = array<i64: 1, 32, 32>}, {pipeline_mode = #tpu.pipeline_mode<synchronous>, transform_indices = @transform_4, window_bounds = array<i64: 1, 32, 1>}, {pipeline_mode = #tpu.pipeline_mode<synchronous>, transform_indices = @transform_5, window_bounds = array<i64: 3, 32>}, {pipeline_mode = #tpu.pipeline_mode<synchronous>, transform_indices = @transform_6, window_bounds = array<i64: 3, 1>}, {transform_indices = @transform_7, window_bounds = array<i64: 3, 1024>}]} {
    %c0 = arith.constant 0 : index
    %c0_0 = arith.constant 0 : index
    %0 = vector.load %arg1[%c0, %c0_0] : memref<1024x4xf32, #tpu.memory_space<vmem>>, vector<1024x4xf32>
    %1 = arith.truncf %0 : vector<1024x4xf32> to vector<1024x4xbf16>
    %c0_1 = arith.constant 0 : index
    %c0_2 = arith.constant 0 : index
    %2 = vector.load %arg2[%c0_1, %c0_2] : memref<32x4xf32, #tpu.memory_space<vmem>>, vector<32x4xf32>
    %3 = arith.truncf %2 : vector<32x4xf32> to vector<32x4xbf16>
    %cst = arith.constant dense<0.000000e+00> : vector<32x1024xf32>
    %4 = tpu.matmul %3, %1, %cst {dimension_numbers = #tpu.dot_dimension_numbers<[1], [1], [0], [0], [0, 0, 1, 0], [], []>} : vector<32x4xbf16>, vector<1024x4xbf16>, vector<32x1024xf32> -> vector<32x1024xf32>
    %c0_3 = arith.constant 0 : index
    %c0_4 = arith.constant 0 : index
    %5 = vector.load %arg3[%c0_3, %c0_4] : memref<32x1xf32, #tpu.memory_space<vmem>>, vector<32x1xf32>
    %6 = vector.broadcast %5 : vector<32x1xf32> to vector<32x1024xf32>
    %7 = arith.addf %4, %6 : vector<32x1024xf32>
    %cst_5 = arith.constant 0.000000e+00 : f32
    %8 = vector.broadcast %cst_5 : f32 to vector<32x1024xf32>
    %9 = arith.maximumf %7, %8 : vector<32x1024xf32>
    %c0_6 = arith.constant 0 : index
    %c0_7 = arith.constant 0 : index
    %c0_8 = arith.constant 0 : index
    %10 = vector.load %arg4[%c0_6, %c0_7, %c0_8] : memref<1x32x32xf32, #tpu.memory_space<vmem>>, vector<1x32x32xf32>
    %11 = vector.shape_cast %10 : vector<1x32x32xf32> to vector<32x32xf32>
    %12 = arith.truncf %11 : vector<32x32xf32> to vector<32x32xbf16>
    %13 = arith.truncf %9 : vector<32x1024xf32> to vector<32x1024xbf16>
    %cst_9 = arith.constant dense<0.000000e+00> : vector<32x1024xf32>
    %14 = tpu.matmul %12, %13, %cst_9 {dimension_numbers = #tpu.dot_dimension_numbers<[1], [0], [0], [1], [0, 0, 1, 1], [], []>} : vector<32x32xbf16>, vector<32x1024xbf16>, vector<32x1024xf32> -> vector<32x1024xf32>
    %c0_10 = arith.constant 0 : index
    %c0_11 = arith.constant 0 : index
    %c0_12 = arith.constant 0 : index
    %15 = vector.load %arg5[%c0_10, %c0_11, %c0_12] : memref<1x32x1xf32, #tpu.memory_space<vmem>>, vector<1x32x1xf32>
    %16 = vector.shape_cast %15 : vector<1x32x1xf32> to vector<32x1xf32>
    %17 = vector.broadcast %16 : vector<32x1xf32> to vector<32x1024xf32>
    %18 = arith.addf %14, %17 : vector<32x1024xf32>
    %cst_13 = arith.constant 0.000000e+00 : f32
    %19 = vector.broadcast %cst_13 : f32 to vector<32x1024xf32>
    %20 = arith.maximumf %18, %19 : vector<32x1024xf32>
    %c0_14 = arith.constant 0 : index
    %c0_15 = arith.constant 0 : index
    %21 = vector.load %arg6[%c0_14, %c0_15] : memref<3x32xf32, #tpu.memory_space<vmem>>, vector<3x32xf32>
    %22 = arith.truncf %21 : vector<3x32xf32> to vector<3x32xbf16>
    %23 = arith.truncf %20 : vector<32x1024xf32> to vector<32x1024xbf16>
    %cst_16 = arith.constant dense<0.000000e+00> : vector<3x1024xf32>
    %24 = tpu.matmul %22, %23, %cst_16 {dimension_numbers = #tpu.dot_dimension_numbers<[1], [0], [0], [1], [0, 0, 1, 1], [], []>} : vector<3x32xbf16>, vector<32x1024xbf16>, vector<3x1024xf32> -> vector<3x1024xf32>
    %c0_17 = arith.constant 0 : index
    %c0_18 = arith.constant 0 : index
    %25 = vector.load %arg7[%c0_17, %c0_18] : memref<3x1xf32, #tpu.memory_space<vmem>>, vector<3x1xf32>
    %26 = vector.broadcast %25 : vector<3x1xf32> to vector<3x1024xf32>
    %27 = arith.addf %24, %26 : vector<3x1024xf32>
    %c0_19 = arith.constant 0 : index
    %c0_20 = arith.constant 0 : index
    %28 = vector.load %arg8[%c0_19, %c0_20] : memref<3x1024xf32, #tpu.memory_space<vmem>>, vector<3x1024xf32>
    tpu.vector_store %arg8[%c0_19, %c0_20], %27 {strides = array<i32>} : memref<3x1024xf32, #tpu.memory_space<vmem>>, vector<3x1024xf32>,
    return
  }
  func.func @transform_0(%arg0: i32) -> (i32, i32) {
    %c0_i32 = arith.constant 0 : i32
    %c0_i32_0 = arith.constant 0 : i32
    return %arg0, %c0_i32 : i32, i32
  }
  func.func @transform_1(%arg0: i32) -> (i32, i32) {
    %c0_i32 = arith.constant 0 : i32
    %c0_i32_0 = arith.constant 0 : i32
    %c0_i32_1 = arith.constant 0 : i32
    return %c0_i32, %c0_i32_0 : i32, i32
  }
  func.func @transform_2(%arg0: i32) -> (i32, i32) {
    %c0_i32 = arith.constant 0 : i32
    %c0_i32_0 = arith.constant 0 : i32
    %c0_i32_1 = arith.constant 0 : i32
    return %c0_i32, %c0_i32_0 : i32, i32
  }
  func.func @transform_3(%arg0: i32) -> (i32, i32, i32) {
    %c0_i32 = arith.constant 0 : i32
    %c0_i32_0 = arith.constant 0 : i32
    %c0_i32_1 = arith.constant 0 : i32
    %c0_i32_2 = arith.constant 0 : i32
    return %c0_i32, %c0_i32_0, %c0_i32_1 : i32, i32, i32
  }
  func.func @transform_4(%arg0: i32) -> (i32, i32, i32) {
    %c0_i32 = arith.constant 0 : i32
    %c0_i32_0 = arith.constant 0 : i32
    %c0_i32_1 = arith.constant 0 : i32
    %c0_i32_2 = arith.constant 0 : i32
    return %c0_i32, %c0_i32_0, %c0_i32_1 : i32, i32, i32
  }
  func.func @transform_5(%arg0: i32) -> (i32, i32) {
    %c0_i32 = arith.constant 0 : i32
    %c0_i32_0 = arith.constant 0 : i32
    %c0_i32_1 = arith.constant 0 : i32
    return %c0_i32, %c0_i32_0 : i32, i32
  }
  func.func @transform_6(%arg0: i32) -> (i32, i32) {
    %c0_i32 = arith.constant 0 : i32
    %c0_i32_0 = arith.constant 0 : i32
    %c0_i32_1 = arith.constant 0 : i32
    return %c0_i32, %c0_i32_0 : i32, i32
  }
  func.func @transform_7(%arg0: i32) -> (i32, i32) {
    %c0_i32 = arith.constant 0 : i32
    %c0_i32_0 = arith.constant 0 : i32
    return %c0_i32, %arg0 : i32, i32
  }
}

</mosaic_0001>

<bundles_post_ra>
// kernel: mlp_pallas.1
= control target key start
LH: loop header
LB: loop body
LE: loop exit
PB: predicated region body
PF: predicated region fallthrough
CT: control target
= control target key end

     0   :  { %vm250_vm0 = vcmask 31744   ;;  %v1375_v42 = vmov 0   ;;  %s2091_s0 = inlined_call_operand.vmem [shape: f32[1000,4], index: 0, kind: input, shape index: {}]   ;;  %s2092_s1 = inlined_call_operand.vmem [shape: f32[32,4], index: 1, kind: input, shape index: {}]   ;;  %s2093_s2 = inlined_call_operand.vmem [shape: f32[32,1], index: 2, kind: input, shape index: {}]   ;;  %s2094_s3 = inlined_call_operand.vmem [shape: f32[1,32,32], index: 3, kind: input, shape index: {}]   ;;  %s2095_s4 = inlined_call_operand.vmem [shape: f32[1,32,1], index: 4, kind: input, shape index: {}]   ;;  %s2096_s5 = inlined_call_operand.vmem [shape: f32[3,32], index: 5, kind: input, shape index: {}]   ;;  %s2097_s6 = inlined_call_operand.vmem [shape: f32[3,1], index: 6, kind: input, shape index: {}]   ;;  %s2098_s7 = inlined_call_operand.hbm [shape: f32[3,1000], index: 7, kind: output, shape index: {}]  }
   0x1   :  { %v44_v0 = vld [vmem:[%s2091_s0 + $0x80] sm:$0xff]  ;;  %v45_v1 = vld [vmem:[%s2091_s0 + $0x88] sm:$0xff]  ;;  %v46_v11 = vld [vmem:[%s2091_s0 + $0x90] sm:$0xff]  ;;  %1349 = vset.pattern.permute.xlu0 %v1375_v42  ;;  %1350 = vset.pattern.permute.xlu1 %v1375_v42 }
   0x2   :  { %v76_v2 = vld [vmem:[%s2091_s0 + $0x180] sm:$0xff]  ;;  %v164_v3 = vpack.c.bf16 %v45_v1, %v44_v0  ;;  %v77_v4 = vld [vmem:[%s2091_s0 + $0x188] sm:$0xff]  ;;  %v47_v13 = vld [vmem:[%s2091_s0 + $0x98] sm:$0xff] }
   0x3   :  { %v28_v5 = vld [vmem:[%s2091_s0] sm:$0xff]  ;;  %v29_v6 = vld [vmem:[%s2091_s0 + $0x8] sm:$0xff]  ;;  %v180_v7 = vpack.c.bf16 %v77_v4, %v76_v2  ;;  %v78_v14 = vld [vmem:[%s2091_s0 + $0x190] sm:$0xff]  ;;  %v165_v17 = vpack.c.bf16 %v47_v13, %v46_v11 }
   0x4   :  { %v156_v8 = vpack.c.bf16 %v29_v6, %v28_v5  ;;  %v60_v9 = vld [vmem:[%s2091_s0 + $0x100] sm:$0xff]  ;;  %v61_v10 = vld [vmem:[%s2091_s0 + $0x108] sm:$0xff]  ;;  %1315 = vmatprep.subr.msk.bf16.mxu0 %vm250_vm0, %v164_v3  ;;  %v79_v15 = vld [vmem:[%s2091_s0 + $0x198] sm:$0xff] }
   0x5   :  { %v172_v12 = vpack.c.bf16 %v61_v10, %v60_v9  ;;  %1323 = vmatprep.subr.msk.bf16.mxu1 %vm250_vm0, %v180_v7  ;;  %v181_v18 = vpack.c.bf16 %v79_v15, %v78_v14  ;;  %v30_v19 = vld [vmem:[%s2091_s0 + $0x10] sm:$0xff]  ;;  %v31_v20 = vld [vmem:[%s2091_s0 + $0x18] sm:$0xff]  ;;  %v48_v26 = vld [vmem:[%s2091_s0 + $0xa0] sm:$0xff] }
   0x6   :  { %v258_v16 = vsel %vm250_vm0, %v156_v8, 0  ;;  %v62_v21 = vld [vmem:[%s2091_s0 + $0x110] sm:$0xff]  ;;  %v63_v23 = vld [vmem:[%s2091_s0 + $0x118] sm:$0xff]  ;;  %v157_v24 = vpack.c.bf16 %v31_v20, %v30_v19  ;;  %v49_v27 = vld [vmem:[%s2091_s0 + $0xa8] sm:$0xff] }
   0x7   :  { %1236 = vmatpush3.bf16.xpose.msra.mxu0 %v258_v16  ;;  %v306_v22 = vsel %vm250_vm0, %v172_v12, 0  ;;  %v173_v25 = vpack.c.bf16 %v63_v23, %v62_v21  ;;  %v80_v28 = vld [vmem:[%s2091_s0 + $0x1a0] sm:$0xff]  ;;  %v81_v29 = vld [vmem:[%s2091_s0 + $0x1a8] sm:$0xff]  ;;  %v166_v31 = vpack.c.bf16 %v49_v27, %v48_v26  ;;  %v50_v40 = vld [vmem:[%s2091_s0 + $0xb0] sm:$0xff] }
   0x8   :  { %1256 = vmatpush3.bf16.xpose.msra.mxu1 %v306_v22  ;;  %1316 = vmatprep.subr.msk.bf16.mxu0 %vm250_vm0, %v165_v17  ;;  %v261_v30 = vsel %vm250_vm0, %v157_v24, 0  ;;  %v182_v33 = vpack.c.bf16 %v81_v29, %v80_v28  ;;  %v32_v34 = vld [vmem:[%s2091_s0 + $0x20] sm:$0xff]  ;;  %v33_v35 = vld [vmem:[%s2091_s0 + $0x28] sm:$0xff]  ;;  %v51_v41 = vld [vmem:[%s2091_s0 + $0xb8] sm:$0xff] }
   0x9   :  { %1324 = vmatprep.subr.msk.bf16.mxu1 %vm250_vm0, %v181_v18  ;;  %v309_v32 = vsel %vm250_vm0, %v173_v25, 0  ;;  %v64_v36 = vld [vmem:[%s2091_s0 + $0x120] sm:$0xff]  ;;  %v65_v37 = vld [vmem:[%s2091_s0 + $0x128] sm:$0xff]  ;;  %v158_v38 = vpack.c.bf16 %v33_v35, %v32_v34  ;;  %v82_v43 = vld [vmem:[%s2091_s0 + $0x1b0] sm:$0xff]  ;;  %v167_v46 = vpack.c.bf16 %v51_v41, %v50_v40 }
   0xa   :  { %v174_v39 = vpack.c.bf16 %v65_v37, %v64_v36  ;;  %v83_v44 = vld [vmem:[%s2091_s0 + $0x1b8] sm:$0xff]  ;;  %v34_v49 = vld [vmem:[%s2091_s0 + $0x30] sm:$0xff]  ;;  %v220_v53 = vld [vmem:[%s2092_s1] sm:$0xff] }
   0xb   :  { %v264_v45 = vsel %vm250_vm0, %v158_v38, 0  ;;  %v183_v48 = vpack.c.bf16 %v83_v44, %v82_v43  ;;  %v35_v50 = vld [vmem:[%s2091_s0 + $0x38] sm:$0xff]  ;;  %v66_v51 = vld [vmem:[%s2091_s0 + $0x130] sm:$0xff]  ;;  %v221_v54 = vld [vmem:[%s2092_s1 + $0x8] sm:$0xff] }
   0xc   :  { %v312_v47 = vsel %vm250_vm0, %v174_v39, 0  ;;  %v67_v52 = vld [vmem:[%s2091_s0 + $0x138] sm:$0xff]  ;;  %v159_v55 = vpack.c.bf16 %v35_v50, %v34_v49  ;;  %v1534_v56 = vpack.c.bf16 %v221_v54, %v220_v53  ;;  %v52_v58 = vld [vmem:[%s2091_s0 + $0xc0] sm:$0xff]  ;;  %v53_v59 = vld [vmem:[%s2091_s0 + $0xc8] sm:$0xff] }
   0xd   :  { %v175_v57 = vpack.c.bf16 %v67_v52, %v66_v51  ;;  %v84_v60 = vld [vmem:[%s2091_s0 + $0x1c0] sm:$0xff]  ;;  %v85_v61 = vld [vmem:[%s2091_s0 + $0x1c8] sm:$0xff]  ;;  %v168_v63 = vpack.c.bf16 %v53_v59, %v52_v58  ;;  %v54_v8 = vld [vmem:[%s2091_s0 + $0xd0] sm:$0xff] }
   0xe   :  { %1251 = vmatprep.mubr.msk.bf16.mxu0 %vm250_vm0, %v1534_v56  ;;  %1271 = vmatprep.mubr.msk.bf16.mxu1 %vm250_vm0, %v1534_v56  ;;  %v267_v62 = vsel %vm250_vm0, %v159_v55, 0  ;;  %v184_v1 = vpack.c.bf16 %v85_v61, %v84_v60  ;;  %v36_v2 = vld [vmem:[%s2091_s0 + $0x40] sm:$0xff]  ;;  %v37_v3 = vld [vmem:[%s2091_s0 + $0x48] sm:$0xff]  ;;  %v55_v9 = vld [vmem:[%s2091_s0 + $0xd8] sm:$0xff] }
   0xf   :  { %1238 = vmatpush3.bf16.xpose.msra.mxu0 %v261_v30  ;;  %v315_v0 = vsel %vm250_vm0, %v175_v57, 0  ;;  %v68_v4 = vld [vmem:[%s2091_s0 + $0x140] sm:$0xff]  ;;  %v69_v5 = vld [vmem:[%s2091_s0 + $0x148] sm:$0xff]  ;;  %v160_v6 = vpack.c.bf16 %v37_v3, %v36_v2  ;;  %v86_v10 = vld [vmem:[%s2091_s0 + $0x1d0] sm:$0xff]  ;;  %v169_v13 = vpack.c.bf16 %v55_v9, %v54_v8 }
  0x10   :  { %1258 = vmatpush3.bf16.xpose.msra.mxu1 %v309_v32  ;;  %1317 = vmatprep.subr.msk.bf16.mxu0 %vm250_vm0, %v166_v31  ;;  %v176_v7 = vpack.c.bf16 %v69_v5, %v68_v4  ;;  %v87_v11 = vld [vmem:[%s2091_s0 + $0x1d8] sm:$0xff]  ;;  %v38_v16 = vld [vmem:[%s2091_s0 + $0x50] sm:$0xff]  ;;  %v56_v22 = vld [vmem:[%s2091_s0 + $0xe0] sm:$0xff] }
  0x11   :  { %1325 = vmatprep.subr.msk.bf16.mxu1 %vm250_vm0, %v182_v33  ;;  %v270_v12 = vsel %vm250_vm0, %v160_v6, 0  ;;  %v185_v15 = vpack.c.bf16 %v87_v11, %v86_v10  ;;  %v39_v17 = vld [vmem:[%s2091_s0 + $0x58] sm:$0xff]  ;;  %v70_v18 = vld [vmem:[%s2091_s0 + $0x150] sm:$0xff]  ;;  %v57_v23 = vld [vmem:[%s2091_s0 + $0xe8] sm:$0xff] }
  0x12   :  { %v318_v14 = vsel %vm250_vm0, %v176_v7, 0  ;;  %v71_v19 = vld [vmem:[%s2091_s0 + $0x158] sm:$0xff]  ;;  %v161_v20 = vpack.c.bf16 %v39_v17, %v38_v16  ;;  %v88_v24 = vld [vmem:[%s2091_s0 + $0x1e0] sm:$0xff]  ;;  %v89_v25 = vld [vmem:[%s2091_s0 + $0x1e8] sm:$0xff]  ;;  %v170_v27 = vpack.c.bf16 %v57_v23, %v56_v22 }
  0x13   :  { %v177_v21 = vpack.c.bf16 %v71_v19, %v70_v18  ;;  %v186_v29 = vpack.c.bf16 %v89_v25, %v88_v24  ;;  %v40_v30 = vld [vmem:[%s2091_s0 + $0x60] sm:$0xff]  ;;  %v41_v31 = vld [vmem:[%s2091_s0 + $0x68] sm:$0xff]  ;;  %v228_v35 = vld [vmem:[%s2093_s2 + $0x10] sm:$0xff] }
  0x14   :  { %v273_v26 = vsel %vm250_vm0, %v161_v20, 0  ;;  %v72_v32 = vld [vmem:[%s2091_s0 + $0x160] sm:$0xff]  ;;  %v73_v33 = vld [vmem:[%s2091_s0 + $0x168] sm:$0xff]  ;;  %v162_v36 = vpack.c.bf16 %v41_v31, %v40_v30  ;;  %v58_v39 = vld [vmem:[%s2091_s0 + $0xf0] sm:$0xff]  ;;  %242 = vperm.xlu1 %1350, %v228_v35  }
  0x15   :  { %v321_v28 = vsel %vm250_vm0, %v177_v21, 0  ;;  %v226_v34 = vld [vmem:[%s2093_s2] sm:$0xff]  ;;  %v227_v37 = vld [vmem:[%s2093_s2 + $0x8] sm:$0xff]  ;;  %v178_v38 = vpack.c.bf16 %v73_v33, %v72_v32  ;;  %v59_v40 = vld [vmem:[%s2091_s0 + $0xf8] sm:$0xff] }
  0x16   :  { %232 = vperm.xlu0 %1349, %v226_v34  }
  0x17   :  { %1240 = vmatpush3.bf16.xpose.msra.mxu0 %v264_v45 }
  0x18   :  { %1260 = vmatpush3.bf16.xpose.msra.mxu1 %v312_v47  ;;  %1318 = vmatprep.subr.msk.bf16.mxu0 %vm250_vm0, %v167_v46 }
  0x19   :  { %1326 = vmatprep.subr.msk.bf16.mxu1 %vm250_vm0, %v183_v48 }
  0x1f   :  { %1242 = vmatpush3.bf16.xpose.msra.mxu0 %v267_v62 }
  0x20   :  { %1262 = vmatpush3.bf16.xpose.msra.mxu1 %v315_v0  ;;  %1319 = vmatprep.subr.msk.bf16.mxu0 %vm250_vm0, %v168_v63 }
  0x21   :  { %1327 = vmatprep.subr.msk.bf16.mxu1 %vm250_vm0, %v184_v1 }
  0x27   :  { %1244 = vmatpush3.bf16.xpose.msra.mxu0 %v270_v12 }
  0x28   :  { %1264 = vmatpush3.bf16.xpose.msra.mxu1 %v318_v14  ;;  %1320 = vmatprep.subr.msk.bf16.mxu0 %vm250_vm0, %v169_v13 }
  0x29   :  { %1328 = vmatprep.subr.msk.bf16.mxu1 %vm250_vm0, %v185_v15 }
  0x2f   :  { %1246 = vmatpush3.bf16.xpose.msra.mxu0 %v273_v26 }
  0x30   :  { %1266 = vmatpush3.bf16.xpose.msra.mxu1 %v321_v28  ;;  %1321 = vmatprep.subr.msk.bf16.mxu0 %vm250_vm0, %v170_v27 }
  0x31   :  { %1329 = vmatprep.subr.msk.bf16.mxu1 %vm250_vm0, %v186_v29 }
  0x32   :  { %12 = vsyncpa [#allocation3], 0  ;;  %v90_v41 = vld [vmem:[%s2091_s0 + $0x1f0] sm:$0xff]  ;;  %v91_v43 = vld [vmem:[%s2091_s0 + $0x1f8] sm:$0xff]  ;;  %237 = vperm.xlu0 %1349, %v227_v37   ;;  %v276_v45 = vsel %vm250_vm0, %v162_v36, 0  ;;  %v171_v46 = vpack.c.bf16 %v59_v40, %v58_v39  ;;  %v324_v48 = vsel %vm250_vm0, %v178_v38, 0 }
  0x33   :  { %v229_v44 = vld [vmem:[%s2093_s2 + $0x18] sm:$0xff]  ;;  %v715_v47 = vld [vmem:[%s2095_s4] sm:$0xff]  ;;  %v187_v49 = vpack.c.bf16 %v91_v43, %v90_v41  ;;  %v42_v50 = vld [vmem:[%s2091_s0 + $0x70] sm:$0xff]  ;;  %vm739_vm1 = vcmask 261120  }
  0x34   :  { %v43_v51 = vld [vmem:[%s2091_s0 + $0x78] sm:$0xff]  ;;  %247 = vperm.xlu1 %1350, %v229_v44   ;;  %v74_v52 = vld [vmem:[%s2091_s0 + $0x170] sm:$0xff]  ;;  %v716_v54 = vld [vmem:[%s2095_s4 + $0x8] sm:$0xff] }
  0x35   :  { %v75_v53 = vld [vmem:[%s2091_s0 + $0x178] sm:$0xff]  ;;  %v163_v55 = vpack.c.bf16 %v43_v51, %v42_v50  ;;  %v717_v57 = vld [vmem:[%s2095_s4 + $0x10] sm:$0xff]  ;;  %v108_v59 = vld [vmem:[%s2091_s0 + $0x280] sm:$0xff] }
  0x36   :  { %721 = vperm.xlu0 %1349, %v715_v47   ;;  %v179_v58 = vpack.c.bf16 %v75_v53, %v74_v52  ;;  %v109_v60 = vld [vmem:[%s2091_s0 + $0x288] sm:$0xff]  ;;  %v140_v61 = vld [vmem:[%s2091_s0 + $0x380] sm:$0xff]  ;;  %v718_v63 = vld [vmem:[%s2095_s4 + $0x18] sm:$0xff] }
  0x37   :  { %1248 = vmatpush3.bf16.xpose.msra.mxu0 %v276_v45  ;;  %v141_v62 = vld [vmem:[%s2091_s0 + $0x388] sm:$0xff]  ;;  %v279_v0 = vsel %vm250_vm0, %v163_v55, 0  ;;  %v196_v1 = vpack.c.bf16 %v109_v60, %v108_v59  ;;  %v1008_v2 = vld [vmem:[%s2097_s6] sm:$0x7]  ;;  %v222_v11 = vld [vmem:[%s2092_s1 + $0x10] sm:$0xff] }
  0x38   :  { %1268 = vmatpush3.bf16.xpose.msra.mxu1 %v324_v48  ;;  %1322 = vmatprep.subr.msk.bf16.mxu0 %vm250_vm0, %v171_v46  ;;  %v327_v3 = vsel %vm250_vm0, %v179_v58, 0  ;;  %v212_v4 = vpack.c.bf16 %v141_v62, %v140_v61  ;;  %v92_v5 = vld [vmem:[%s2091_s0 + $0x200] sm:$0xff]  ;;  %v93_v6 = vld [vmem:[%s2091_s0 + $0x208] sm:$0xff]  ;;  %v223_v12 = vld [vmem:[%s2092_s1 + $0x18] sm:$0xff] }
  0x39   :  { %1330 = vmatprep.subr.msk.bf16.mxu1 %vm250_vm0, %v187_v49  ;;  %726 = vperm.xlu1 %1350, %v716_v54   ;;  %v124_v7 = vld [vmem:[%s2091_s0 + $0x300] sm:$0xff]  ;;  %v125_v8 = vld [vmem:[%s2091_s0 + $0x308] sm:$0xff]  ;;  %v188_v9 = vpack.c.bf16 %v93_v6, %v92_v5  ;;  %v110_v13 = vld [vmem:[%s2091_s0 + $0x290] sm:$0xff]  ;;  %v1727_v18 = vpack.c.bf16 %v223_v12, %v222_v11 }
  0x3a   :  { %731 = vperm.xlu0 %1349, %v717_v57   ;;  %v204_v10 = vpack.c.bf16 %v125_v8, %v124_v7  ;;  %v111_v14 = vld [vmem:[%s2091_s0 + $0x298] sm:$0xff]  ;;  %v142_v15 = vld [vmem:[%s2091_s0 + $0x390] sm:$0xff]  ;;  %v112_v28 = vld [vmem:[%s2091_s0 + $0x2a0] sm:$0xff] }
  0x3b   :  { %v143_v16 = vld [vmem:[%s2091_s0 + $0x398] sm:$0xff]  ;;  %v354_v17 = vsel %vm250_vm0, %v188_v9, 0  ;;  %v197_v20 = vpack.c.bf16 %v111_v14, %v110_v13  ;;  %v94_v21 = vld [vmem:[%s2091_s0 + $0x210] sm:$0xff]  ;;  %v113_v29 = vld [vmem:[%s2091_s0 + $0x2a8] sm:$0xff] }
  0x3c   :  { %v402_v19 = vsel %vm250_vm0, %v204_v10, 0  ;;  %v95_v22 = vld [vmem:[%s2091_s0 + $0x218] sm:$0xff]  ;;  %v213_v23 = vpack.c.bf16 %v143_v16, %v142_v15  ;;  %v126_v24 = vld [vmem:[%s2091_s0 + $0x310] sm:$0xff]  ;;  %v144_v30 = vld [vmem:[%s2091_s0 + $0x3a0] sm:$0xff]  ;;  %v198_v33 = vpack.c.bf16 %v113_v29, %v112_v28 }
  0x3d   :  { %736 = vperm.xlu1 %1350, %v718_v63   ;;  %v127_v25 = vld [vmem:[%s2091_s0 + $0x318] sm:$0xff]  ;;  %v189_v26 = vpack.c.bf16 %v95_v22, %v94_v21  ;;  %v145_v31 = vld [vmem:[%s2091_s0 + $0x3a8] sm:$0xff]  ;;  %v96_v36 = vld [vmem:[%s2091_s0 + $0x220] sm:$0xff] }
  0x3e   :  { %1011 = vperm.xlu0 %1349, %v1008_v2   ;;  %v205_v27 = vpack.c.bf16 %v127_v25, %v126_v24  ;;  %v214_v35 = vpack.c.bf16 %v145_v31, %v144_v30  ;;  %v97_v37 = vld [vmem:[%s2091_s0 + $0x228] sm:$0xff]  ;;  %v128_v38 = vld [vmem:[%s2091_s0 + $0x320] sm:$0xff]  ;;  %v114_v43 = vld [vmem:[%s2091_s0 + $0x2b0] sm:$0xff] }
  0x3f   :  { %1250 = vmatpush3.bf16.xpose.msra.mxu0 %v279_v0  ;;  %v357_v32 = vsel %vm250_vm0, %v189_v26, 0  ;;  %v129_v39 = vld [vmem:[%s2091_s0 + $0x328] sm:$0xff]  ;;  %v190_v40 = vpack.c.bf16 %v97_v37, %v96_v36  ;;  %v115_v44 = vld [vmem:[%s2091_s0 + $0x2b8] sm:$0xff]  ;;  %v146_v45 = vld [vmem:[%s2091_s0 + $0x3b0] sm:$0xff] }
  0x40   :  { %1270 = vmatpush3.bf16.xpose.msra.mxu1 %v327_v3  ;;  %1331 = vmatprep.subr.msk.bf16.mxu0 %vm250_vm0, %v196_v1  ;;  %v405_v34 = vsel %vm250_vm0, %v205_v27, 0  ;;  %v206_v41 = vpack.c.bf16 %v129_v39, %v128_v38  ;;  %v147_v46 = vld [vmem:[%s2091_s0 + $0x3b8] sm:$0xff]  ;;  %v199_v48 = vpack.c.bf16 %v115_v44, %v114_v43  ;;  %v98_v51 = vld [vmem:[%s2091_s0 + $0x230] sm:$0xff]  ;;  %v116_v58 = vld [vmem:[%s2091_s0 + $0x2c0] sm:$0xff] }
  0x41   :  { %1339 = vmatprep.subr.msk.bf16.mxu1 %vm250_vm0, %v212_v4  ;;  %v360_v47 = vsel %vm250_vm0, %v190_v40, 0  ;;  %v215_v50 = vpack.c.bf16 %v147_v46, %v146_v45  ;;  %v99_v52 = vld [vmem:[%s2091_s0 + $0x238] sm:$0xff]  ;;  %v130_v53 = vld [vmem:[%s2091_s0 + $0x330] sm:$0xff]  ;;  %v117_v59 = vld [vmem:[%s2091_s0 + $0x2c8] sm:$0xff] }
  0x42   :  { %v408_v49 = vsel %vm250_vm0, %v206_v41, 0  ;;  %v131_v54 = vld [vmem:[%s2091_s0 + $0x338] sm:$0xff]  ;;  %v191_v55 = vpack.c.bf16 %v99_v52, %v98_v51  ;;  %v148_v60 = vld [vmem:[%s2091_s0 + $0x3c0] sm:$0xff]  ;;  %v149_v61 = vld [vmem:[%s2091_s0 + $0x3c8] sm:$0xff]  ;;  %v200_v63 = vpack.c.bf16 %v117_v59, %v116_v58 }
  0x43   :  { %v207_v57 = vpack.c.bf16 %v131_v54, %v130_v53  ;;  %v216_v1 = vpack.c.bf16 %v149_v61, %v148_v60  ;;  %v100_v2 = vld [vmem:[%s2091_s0 + $0x240] sm:$0xff]  ;;  %v101_v3 = vld [vmem:[%s2091_s0 + $0x248] sm:$0xff]  ;;  %v118_v8 = vld [vmem:[%s2091_s0 + $0x2d0] sm:$0xff] }
  0x44   :  { %v363_v62 = vsel %vm250_vm0, %v191_v55, 0  ;;  %v132_v4 = vld [vmem:[%s2091_s0 + $0x340] sm:$0xff]  ;;  %v133_v5 = vld [vmem:[%s2091_s0 + $0x348] sm:$0xff]  ;;  %v192_v6 = vpack.c.bf16 %v101_v3, %v100_v2  ;;  %v119_v9 = vld [vmem:[%s2091_s0 + $0x2d8] sm:$0xff] }
  0x45   :  { %v411_v0 = vsel %vm250_vm0, %v207_v57, 0  ;;  %v208_v7 = vpack.c.bf16 %v133_v5, %v132_v4  ;;  %v150_v10 = vld [vmem:[%s2091_s0 + $0x3d0] sm:$0xff]  ;;  %v151_v11 = vld [vmem:[%s2091_s0 + $0x3d8] sm:$0xff]  ;;  %v201_v13 = vpack.c.bf16 %v119_v9, %v118_v8  ;;  %v121_v24 = vld [vmem:[%s2091_s0 + $0x2e8] sm:$0xff] }
  0x46   :  { %1252 = vmatmul.mubr.msk.bf16.vlgmr.msra.gmra.mrb[0].mxu0 %vm250_vm0, %v1534_v56  ;;  %v366_v12 = vsel %vm250_vm0, %v192_v6, 0  ;;  %v217_v15 = vpack.c.bf16 %v151_v11, %v150_v10  ;;  %v102_v16 = vld [vmem:[%s2091_s0 + $0x250] sm:$0xff]  ;;  %v152_v25 = vld [vmem:[%s2091_s0 + $0x3e0] sm:$0xff]  ;;  %v153_v26 = vld [vmem:[%s2091_s0 + $0x3e8] sm:$0xff] }
  0x47   :  { %1272 = vmatmul.mubr.msk.bf16.vlgmr.msra.gmra.mrb[0].mxu1 %vm250_vm0, %v1534_v56  ;;  %1276 = vmatpush3.bf16.xpose.msra.mxu0 %v354_v17  ;;  %v414_v14 = vsel %vm250_vm0, %v208_v7, 0  ;;  %v103_v17 = vld [vmem:[%s2091_s0 + $0x258] sm:$0xff]  ;;  %v218_v30 = vpack.c.bf16 %v153_v26, %v152_v25  ;;  %v104_v31 = vld [vmem:[%s2091_s0 + $0x260] sm:$0xff]  ;;  %v122_v37 = vld [vmem:[%s2091_s0 + $0x2f0] sm:$0xff] }
  0x48   :  { %1296 = vmatpush3.bf16.xpose.msra.mxu1 %v402_v19  ;;  %1253 = vmatprep.mubr.msk.bf16.mxu0 %vm250_vm0, %v1727_v18  ;;  %v134_v19 = vld [vmem:[%s2091_s0 + $0x350] sm:$0xff]  ;;  %v193_v21 = vpack.c.bf16 %v103_v17, %v102_v16  ;;  %v123_v38 = vld [vmem:[%s2091_s0 + $0x2f8] sm:$0xff] }
  0x49   :  { %1273 = vmatprep.mubr.msk.bf16.mxu1 %vm250_vm0, %v1727_v18  ;;  %1332 = vmatprep.subr.msk.bf16.mxu0 %vm250_vm0, %v197_v20  ;;  %v135_v20 = vld [vmem:[%s2091_s0 + $0x358] sm:$0xff]  ;;  %v154_v39 = vld [vmem:[%s2091_s0 + $0x3f0] sm:$0xff]  ;;  %v203_v43 = vpack.c.bf16 %v123_v38, %v122_v37 }
  0x4a   :  { %1340 = vmatprep.subr.msk.bf16.mxu1 %vm250_vm0, %v213_v23  ;;  %v209_v22 = vpack.c.bf16 %v135_v20, %v134_v19  ;;  %v120_v23 = vld [vmem:[%s2091_s0 + $0x2e0] sm:$0xff]  ;;  %v369_v27 = vsel %vm250_vm0, %v193_v21, 0  ;;  %v155_v40 = vld [vmem:[%s2091_s0 + $0x3f8] sm:$0xff]  ;;  %v106_v46 = vld [vmem:[%s2091_s0 + $0x270] sm:$0xff] }
  0x4b   :  { %v202_v28 = vpack.c.bf16 %v121_v24, %v120_v23  ;;  %v219_v45 = vpack.c.bf16 %v155_v40, %v154_v39 }
  0x4c   :  { %v417_v29 = vsel %vm250_vm0, %v209_v22, 0 }
  0x4e   :  { %1254 = vmatmul.mubr.msk.bf16.gmra.mrb[4].mxu0 %vm250_vm0, %v1727_v18 }
  0x4f   :  { %1274 = vmatmul.mubr.msk.bf16.gmra.mrb[4].mxu1 %vm250_vm0, %v1727_v18  ;;  %1278 = vmatpush3.bf16.xpose.msra.mxu0 %v357_v32  ;;  %v105_v32 = vld [vmem:[%s2091_s0 + $0x268] sm:$0xff] }
  0x50   :  { %1298 = vmatpush3.bf16.xpose.msra.mxu1 %v405_v34  ;;  %1333 = vmatprep.subr.msk.bf16.mxu0 %vm250_vm0, %v198_v33  ;;  %v136_v33 = vld [vmem:[%s2091_s0 + $0x360] sm:$0xff]  ;;  %v137_v34 = vld [vmem:[%s2091_s0 + $0x368] sm:$0xff] }
  0x51   :  { %1341 = vmatprep.subr.msk.bf16.mxu1 %vm250_vm0, %v214_v35  ;;  %1291 = vmatprep.mubr.msk.bf16.mxu0 %vm250_vm0, %v1534_v56  ;;  %v194_v35 = vpack.c.bf16 %v105_v32, %v104_v31  ;;  %v210_v36 = vpack.c.bf16 %v137_v34, %v136_v33 }
  0x52   :  { %1311 = vmatprep.mubr.msk.bf16.mxu1 %vm250_vm0, %v1534_v56 }
  0x53   :  { %v372_v41 = vsel %vm250_vm0, %v194_v35, 0  ;;  %v420_v44 = vsel %vm250_vm0, %v210_v36, 0 }
  0x57   :  { %1280 = vmatpush3.bf16.xpose.msra.mxu0 %v360_v47  ;;  %v107_v47 = vld [vmem:[%s2091_s0 + $0x278] sm:$0xff] }
  0x58   :  { %1300 = vmatpush3.bf16.xpose.msra.mxu1 %v408_v49  ;;  %1334 = vmatprep.subr.msk.bf16.mxu0 %vm250_vm0, %v199_v48  ;;  %v138_v48 = vld [vmem:[%s2091_s0 + $0x370] sm:$0xff]  ;;  %v139_v49 = vld [vmem:[%s2091_s0 + $0x378] sm:$0xff] }
  0x59   :  { %1342 = vmatprep.subr.msk.bf16.mxu1 %vm250_vm0, %v215_v50  ;;  %v195_v50 = vpack.c.bf16 %v107_v47, %v106_v46  ;;  %v211_v51 = vpack.c.bf16 %v139_v49, %v138_v48  ;;  %v693_v48 = vld [vmem:[%s2094_s3] sm:$0xff]  ;;  %v694_v49 = vld [vmem:[%s2094_s3 + $0x8] sm:$0xff] }
  0x5b   :  { %v375_v52 = vsel %vm250_vm0, %v195_v50, 0  ;;  %v423_v53 = vsel %vm250_vm0, %v211_v51, 0 }
  0x5f   :  { %1282 = vmatpush3.bf16.xpose.msra.mxu0 %v363_v62 }
  0x60   :  { %1302 = vmatpush3.bf16.xpose.msra.mxu1 %v411_v0  ;;  %1335 = vmatprep.subr.msk.bf16.mxu0 %vm250_vm0, %v200_v63 }
  0x61   :  { %1343 = vmatprep.subr.msk.bf16.mxu1 %vm250_vm0, %v216_v1 }
  0x67   :  { %1284 = vmatpush3.bf16.xpose.msra.mxu0 %v366_v12 }
  0x68   :  { %1304 = vmatpush3.bf16.xpose.msra.mxu1 %v414_v14  ;;  %1336 = vmatprep.subr.msk.bf16.mxu0 %vm250_vm0, %v201_v13 }
  0x69   :  { %1344 = vmatprep.subr.msk.bf16.mxu1 %vm250_vm0, %v217_v15 }
  0x6f   :  { %1286 = vmatpush3.bf16.xpose.msra.mxu0 %v369_v27 }
  0x70   :  { %1306 = vmatpush3.bf16.xpose.msra.mxu1 %v417_v29  ;;  %1337 = vmatprep.subr.msk.bf16.mxu0 %vm250_vm0, %v202_v28 }
  0x71   :  { %1345 = vmatprep.subr.msk.bf16.mxu1 %vm250_vm0, %v218_v30 }
  0x77   :  { %1288 = vmatpush3.bf16.xpose.msra.mxu0 %v372_v41 }
  0x78   :  { %1308 = vmatpush3.bf16.xpose.msra.mxu1 %v420_v44  ;;  %1338 = vmatprep.subr.msk.bf16.mxu0 %vm250_vm0, %v203_v43 }
  0x79   :  { %1346 = vmatprep.subr.msk.bf16.mxu1 %vm250_vm0, %v219_v45 }
  0x7f   :  { %1290 = vmatpush3.bf16.xpose.msra.mxu0 %v375_v52 }
  0x80   :  { %1310 = vmatpush3.bf16.xpose.msra.mxu1 %v423_v53  ;;  %v1974_v53 = vpack.c.bf16 %v694_v49, %v693_v48 }
  0x86   :  { %1292 = vmatmul.mubr.msk.bf16.vlgmr.msra.gmra.mrb[8].mxu0 %vm250_vm0, %v1534_v56 }
  0x87   :  { %1312 = vmatmul.mubr.msk.bf16.vlgmr.msra.gmra.mrb[8].mxu1 %vm250_vm0, %v1534_v56  ;;  %1293 = vmatprep.mubr.msk.bf16.mxu0 %vm250_vm0, %v1727_v18 }
  0x88   :  { %1313 = vmatprep.mubr.msk.bf16.mxu1 %vm250_vm0, %v1727_v18 }
  0x8e   :  { %1294 = vmatmul.mubr.msk.bf16.gmra.mrb[12].mxu0 %vm250_vm0, %v1727_v18 }
  0x8f   :  { %1314 = vmatmul.mubr.msk.bf16.gmra.mrb[12].mxu1 %vm250_vm0, %v1727_v18  ;;  %778 = vmatprep.mubr.bf16.mxu0 %v1375_v42 }
  0x90   :  { %831 = vmatprep.mubr.bf16.mxu1 %v1375_v42 }
  0x93   :  { %v1946_v55 = vpop.permute.xlu1 %242 }
  0x95   :  { %v1944_v54 = vpop.permute.xlu0 %232 }
  0xb1   :  { %v1948_v57 = vpop.permute.xlu0 %237 }
  0xb3   :  { %v1958_v21 = vpop.permute.xlu1 %247 }
 0x119   :  { %v483_v56 = vpop.f32.mrb[0].mxu0 }
 0x11a   :  { %v484_v58 = vadd.f32 %v483_v56, %v1944_v54  ;;  %v536_v59 = vpop.f32.mrb[0].mxu1  ;;  %v485_v60 = vpop.f32.mrb[1].mxu0  ;;  %v695_v56 = vld [vmem:[%s2094_s3 + $0x10] sm:$0xff] }
 0x11b   :  { %v537_v61 = vadd.f32 %v536_v59, %v1944_v54  ;;  %v486_v62 = vadd.f32 %v485_v60, %v1944_v54  ;;  %v538_v18 = vpop.f32.mrb[1].mxu1  ;;  %v487_v63 = vpop.f32.mrb[2].mxu0 }
 0x11c   :  { %v661_v0 = vmax.f32 %v484_v58, 0.0  ;;  %v539_v1 = vadd.f32 %v538_v18, %v1944_v54  ;;  %v488_v2 = vadd.f32 %v487_v63, %v1948_v57  ;;  %v540_v3 = vpop.f32.mrb[2].mxu1  ;;  %v489_v4 = vpop.f32.mrb[3].mxu0  ;;  %v696_v58 = vld [vmem:[%s2094_s3 + $0x18] sm:$0xff] }
 0x11d   :  { %v663_v5 = vmax.f32 %v537_v61, 0.0  ;;  %v541_v6 = vadd.f32 %v540_v3, %v1948_v57  ;;  %v490_v7 = vadd.f32 %v489_v4, %v1948_v57  ;;  %v542_v8 = vpop.f32.mrb[3].mxu1  ;;  %v662_v11 = vmax.f32 %v486_v62, 0.0 }
 0x11e   :  { %v669_v9 = vmax.f32 %v488_v2, 0.0  ;;  %v543_v10 = vadd.f32 %v542_v8, %v1948_v57  ;;  %v664_v14 = vmax.f32 %v539_v1, 0.0  ;;  %v1988_v59 = vpack.c.bf16 %v696_v58, %v695_v56 }
 0x11f   :  { %v671_v12 = vmax.f32 %v541_v6, 0.0  ;;  %v670_v13 = vmax.f32 %v490_v7, 0.0 }
 0x120   :  { %v699_v15 = vpack.c.bf16 %v669_v9, %v661_v0  ;;  %v672_v16 = vmax.f32 %v543_v10, 0.0 }
 0x121   :  { %v701_v17 = vpack.c.bf16 %v671_v12, %v663_v5  ;;  %v700_v19 = vpack.c.bf16 %v670_v13, %v662_v11  ;;  %v493_v20 = vpop.f32.mrb[4].mxu0 }
 0x122   :  { %v702_v22 = vpack.c.bf16 %v672_v16, %v664_v14  ;;  %v494_v23 = vadd.f32 %v493_v20, %v1946_v55  ;;  %v546_v24 = vpop.f32.mrb[4].mxu1  ;;  %v495_v25 = vpop.f32.mrb[5].mxu0 }
 0x123   :  { %v547_v26 = vadd.f32 %v546_v24, %v1946_v55  ;;  %v496_v27 = vadd.f32 %v495_v25, %v1946_v55  ;;  %v548_v28 = vpop.f32.mrb[5].mxu1  ;;  %v497_v29 = vpop.f32.mrb[6].mxu0  ;;  %746 = vmatprep.subr.bf16.mxu0 %v700_v19 }
 0x124   :  { %v677_v30 = vmax.f32 %v494_v23, 0.0  ;;  %v549_v31 = vadd.f32 %v548_v28, %v1946_v55  ;;  %v550_v32 = vpop.f32.mrb[6].mxu1  ;;  %799 = vmatprep.subr.bf16.mxu1 %v702_v22  ;;  %v499_v33 = vpop.f32.mrb[7].mxu0  ;;  %747 = vmatpush1.bf16.msra.mxu0 %v699_v15  ;;  %v498_v34 = vadd.f32 %v497_v29, %v1958_v21 }
 0x125   :  { %v679_v35 = vmax.f32 %v547_v26, 0.0  ;;  %v678_v36 = vmax.f32 %v496_v27, 0.0  ;;  %v500_v37 = vadd.f32 %v499_v33, %v1958_v21  ;;  %v552_v38 = vpop.f32.mrb[7].mxu1  ;;  %800 = vmatpush1.bf16.msra.mxu1 %v701_v17  ;;  %v551_v39 = vadd.f32 %v550_v32, %v1958_v21 }
 0x126   :  { %v680_v40 = vmax.f32 %v549_v31, 0.0  ;;  %v553_v41 = vadd.f32 %v552_v38, %v1958_v21  ;;  %v685_v43 = vmax.f32 %v498_v34, 0.0 }
 0x127   :  { %v686_v44 = vmax.f32 %v500_v37, 0.0  ;;  %v687_v45 = vmax.f32 %v551_v39, 0.0 }
 0x128   :  { %v688_v46 = vmax.f32 %v553_v41, 0.0  ;;  %v707_v47 = vpack.c.bf16 %v685_v43, %v677_v30 }
 0x129   :  { %v708_v50 = vpack.c.bf16 %v686_v44, %v678_v36  ;;  %v709_v51 = vpack.c.bf16 %v687_v45, %v679_v35 }
 0x12a   :  { %v710_v52 = vpack.c.bf16 %v688_v46, %v680_v40 }
 0x12b   :  { %748 = vmatprep.subr.bf16.mxu0 %v708_v50 }
 0x12c   :  { %801 = vmatprep.subr.bf16.mxu1 %v710_v52  ;;  %749 = vmatpush1.bf16.msra.mxu0 %v707_v47 }
 0x12d   :  { %802 = vmatpush1.bf16.msra.mxu1 %v709_v51  ;;  %v2026_v51 = vpop.permute.xlu1 %726 }
 0x12f   :  { %1223 = vmatmul.mubr.msk.bf16.vlgmr.msra.gmra.mrb[16].mxu0 %vm739_vm1, %v1974_v53 }
 0x130   :  { %1225 = vmatmul.mubr.msk.bf16.vlgmr.msra.gmra.mrb[16].mxu1 %vm739_vm1, %v1974_v53  ;;  %788 = vmatprep.mubr.bf16.mxu0 %v1375_v42 }
 0x131   :  { %841 = vmatprep.mubr.bf16.mxu1 %v1375_v42 }
 0x137   :  { %1224 = vmatmul.mubr.msk.bf16.gmra.mrb[20].mxu0 %vm739_vm1, %v1988_v59 }
 0x138   :  { %1226 = vmatmul.mubr.msk.bf16.gmra.mrb[20].mxu1 %vm739_vm1, %v1988_v59  ;;  %884 = vmatprep.mubr.bf16.mxu0 %v1375_v42 }
 0x139   :  { %937 = vmatprep.mubr.bf16.mxu1 %v1375_v42 }
 0x159   :  { %v589_v60 = vpop.f32.mrb[8].mxu0 }
 0x15a   :  { %v590_v61 = vadd.f32 %v589_v60, %v1944_v54  ;;  %v642_v62 = vpop.f32.mrb[8].mxu1  ;;  %v591_v18 = vpop.f32.mrb[9].mxu0 }
 0x15b   :  { %v643_v63 = vadd.f32 %v642_v62, %v1944_v54  ;;  %v592_v0 = vadd.f32 %v591_v18, %v1944_v54  ;;  %v644_v1 = vpop.f32.mrb[9].mxu1  ;;  %v593_v2 = vpop.f32.mrb[10].mxu0 }
 0x15c   :  { %v645_v3 = vadd.f32 %v644_v1, %v1944_v54  ;;  %v594_v4 = vadd.f32 %v593_v2, %v1948_v57  ;;  %v646_v5 = vpop.f32.mrb[10].mxu1  ;;  %v595_v6 = vpop.f32.mrb[11].mxu0  ;;  %v665_v10 = vmax.f32 %v590_v61, 0.0 }
 0x15d   :  { %v647_v7 = vadd.f32 %v646_v5, %v1948_v57  ;;  %v596_v8 = vadd.f32 %v595_v6, %v1948_v57  ;;  %v648_v9 = vpop.f32.mrb[11].mxu1  ;;  %v667_v13 = vmax.f32 %v643_v63, 0.0  ;;  %v666_v14 = vmax.f32 %v592_v0, 0.0 }
 0x15e   :  { %v673_v11 = vmax.f32 %v594_v4, 0.0  ;;  %v649_v12 = vadd.f32 %v648_v9, %v1948_v57  ;;  %v668_v17 = vmax.f32 %v645_v3, 0.0 }
 0x15f   :  { %v675_v15 = vmax.f32 %v647_v7, 0.0  ;;  %v674_v16 = vmax.f32 %v596_v8, 0.0 }
 0x160   :  { %v703_v19 = vpack.c.bf16 %v673_v11, %v665_v10  ;;  %v676_v54 = vmax.f32 %v649_v12, 0.0 }
 0x161   :  { %v705_v20 = vpack.c.bf16 %v675_v15, %v667_v13  ;;  %v704_v22 = vpack.c.bf16 %v674_v16, %v666_v14  ;;  %v599_v23 = vpop.f32.mrb[12].mxu0  ;;  %v2038_v16 = vpop.permute.xlu1 %736 }
 0x162   :  { %v706_v24 = vpack.c.bf16 %v676_v54, %v668_v17  ;;  %v600_v25 = vadd.f32 %v599_v23, %v1946_v55  ;;  %v652_v26 = vpop.f32.mrb[12].mxu1  ;;  %v601_v27 = vpop.f32.mrb[13].mxu0 }
 0x163   :  { %v653_v28 = vadd.f32 %v652_v26, %v1946_v55  ;;  %v602_v29 = vadd.f32 %v601_v27, %v1946_v55  ;;  %v654_v57 = vpop.f32.mrb[13].mxu1  ;;  %v603_v30 = vpop.f32.mrb[14].mxu0  ;;  %852 = vmatprep.subr.bf16.mxu0 %v704_v22 }
 0x164   :  { %v655_v31 = vadd.f32 %v654_v57, %v1946_v55  ;;  %v604_v32 = vadd.f32 %v603_v30, %v1958_v21  ;;  %v656_v33 = vpop.f32.mrb[14].mxu1  ;;  %905 = vmatprep.subr.bf16.mxu1 %v706_v24  ;;  %v605_v34 = vpop.f32.mrb[15].mxu0  ;;  %853 = vmatpush1.bf16.msra.mxu0 %v703_v19  ;;  %v681_v38 = vmax.f32 %v600_v25, 0.0 }
 0x165   :  { %v657_v35 = vadd.f32 %v656_v33, %v1958_v21  ;;  %v606_v36 = vadd.f32 %v605_v34, %v1958_v21  ;;  %v658_v37 = vpop.f32.mrb[15].mxu1  ;;  %906 = vmatpush1.bf16.msra.mxu1 %v705_v20  ;;  %v683_v41 = vmax.f32 %v653_v28, 0.0  ;;  %v682_v43 = vmax.f32 %v602_v29, 0.0 }
 0x166   :  { %v689_v39 = vmax.f32 %v604_v32, 0.0  ;;  %v659_v40 = vadd.f32 %v658_v37, %v1958_v21  ;;  %v684_v45 = vmax.f32 %v655_v31, 0.0  ;;  %v2024_v21 = vpop.permute.xlu0 %721 }
 0x167   :  { %v691_v44 = vmax.f32 %v657_v35, 0.0  ;;  %v690_v55 = vmax.f32 %v606_v36, 0.0 }
 0x168   :  { %v711_v46 = vpack.c.bf16 %v689_v39, %v681_v38  ;;  %v692_v47 = vmax.f32 %v659_v40, 0.0 }
 0x169   :  { %v713_v48 = vpack.c.bf16 %v691_v44, %v683_v41  ;;  %v712_v49 = vpack.c.bf16 %v690_v55, %v682_v43 }
 0x16a   :  { %v714_v50 = vpack.c.bf16 %v692_v47, %v684_v45  ;;  %v2036_v12 = vpop.permute.xlu0 %731  ;;  %v990_v45 = vld [vmem:[%s2096_s5] sm:$0x7]  ;;  %s1376_s5 = smov [#allocation2]  }
 0x16b   :  { %854 = vmatprep.subr.bf16.mxu0 %v712_v49  ;;  %v2051_v49 = vpack.c.bf16 %v990_v45, %v990_v45  ;;  %s1207_s17 = sshll.u32 %s1376_s5, 4  ;;  %s1208_s17 = int_to_ptr.vmem [resolvable:$true] %s1207_s17 }
 0x16c   :  { %907 = vmatprep.subr.bf16.mxu1 %v714_v50  ;;  %855 = vmatpush1.bf16.msra.mxu0 %v711_v46  ;;  %s1351_s18 = scalar_lea.vmem %s1208_s17, 512  ;;  %p1356_p1 = scmp.lt.s32.totalorder %s1208_s17, %s1208_s17 }
 0x16d   :  { %908 = vmatpush1.bf16.msra.mxu1 %v713_v48  ;;  %p1352_p0 = scmp.ne.s32.totalorder %s1208_s17, %s1351_s18  ;;  %p1357_p2 = scmp.lt.s32.totalorder %s1351_s18, %s1351_s18 }
 0x16f   :  { %1227 = vmatmul.mubr.msk.bf16.vlgmr.msra.gmra.mrb[24].mxu0 %vm739_vm1, %v1974_v53  ;;  %p1358_p3 = por %p1357_p2, %p1356_p1 }
 0x170   :  { %1229 = vmatmul.mubr.msk.bf16.vlgmr.msra.gmra.mrb[24].mxu1 %vm739_vm1, %v1974_v53  ;;  %894 = vmatprep.mubr.bf16.mxu0 %v1375_v42 }
 0x171   :  { %947 = vmatprep.mubr.bf16.mxu1 %v1375_v42  ;;  %p1359_p4 = pnand %p1358_p3, %p1352_p0 }
 0x177   :  { %1228 = vmatmul.mubr.msk.bf16.gmra.mrb[28].mxu0 %vm739_vm1, %v1988_v59 }
 0x178   :  { %1230 = vmatmul.mubr.msk.bf16.gmra.mrb[28].mxu1 %vm739_vm1, %v1988_v59  ;;  %1049 = vmatprep.mubr.bf16.mxu0 %v1375_v42 }
 0x179   :  { %1090 = vmatprep.mubr.bf16.mxu1 %v1375_v42 }
 0x202   :  { %v780_v52 = vpop.f32.mrb[16].mxu0 }
 0x203   :  { %v781_v53 = vadd.f32 %v780_v52, %v2024_v21  ;;  %v833_v56 = vpop.f32.mrb[16].mxu1  ;;  %v782_v58 = vpop.f32.mrb[17].mxu0 }
 0x204   :  { %v834_v60 = vadd.f32 %v833_v56, %v2024_v21  ;;  %v783_v61 = vadd.f32 %v782_v58, %v2024_v21  ;;  %v835_v62 = vpop.f32.mrb[17].mxu1  ;;  %v784_v18 = vpop.f32.mrb[18].mxu0 }
 0x205   :  { %v836_v59 = vadd.f32 %v835_v62, %v2024_v21  ;;  %v785_v63 = vadd.f32 %v784_v18, %v2026_v51  ;;  %v837_v0 = vpop.f32.mrb[18].mxu1  ;;  %v786_v1 = vpop.f32.mrb[19].mxu0  ;;  %v958_v5 = vmax.f32 %v781_v53, 0.0 }
 0x206   :  { %v838_v2 = vadd.f32 %v837_v0, %v2026_v51  ;;  %v787_v3 = vadd.f32 %v786_v1, %v2026_v51  ;;  %v839_v4 = vpop.f32.mrb[19].mxu1  ;;  %v960_v8 = vmax.f32 %v834_v60, 0.0  ;;  %v959_v9 = vmax.f32 %v783_v61, 0.0 }
 0x207   :  { %v966_v6 = vmax.f32 %v785_v63, 0.0  ;;  %v840_v7 = vadd.f32 %v839_v4, %v2026_v51  ;;  %v961_v13 = vmax.f32 %v836_v59, 0.0 }
 0x208   :  { %v968_v10 = vmax.f32 %v838_v2, 0.0  ;;  %v967_v11 = vmax.f32 %v787_v3, 0.0 }
 0x209   :  { %v992_v14 = vpack.c.bf16 %v966_v6, %v958_v5  ;;  %v969_v15 = vmax.f32 %v840_v7, 0.0 }
 0x20a   :  { %v994_v17 = vpack.c.bf16 %v968_v10, %v960_v8  ;;  %v993_v19 = vpack.c.bf16 %v967_v11, %v959_v9  ;;  %v790_v54 = vpop.f32.mrb[20].mxu0 }
 0x20b   :  { %v995_v20 = vpack.c.bf16 %v969_v15, %v961_v13  ;;  %v791_v22 = vadd.f32 %v790_v54, %v2036_v12  ;;  %v843_v23 = vpop.f32.mrb[20].mxu1  ;;  %v792_v24 = vpop.f32.mrb[21].mxu0 }
 0x20c   :  { %v844_v25 = vadd.f32 %v843_v23, %v2036_v12  ;;  %v793_v26 = vadd.f32 %v792_v24, %v2036_v12  ;;  %v845_v27 = vpop.f32.mrb[21].mxu1  ;;  %v794_v28 = vpop.f32.mrb[22].mxu0  ;;  %1017 = vmatprep.subr.bf16.mxu0 %v993_v19 }
 0x20d   :  { %v846_v29 = vadd.f32 %v845_v27, %v2036_v12  ;;  %v795_v57 = vadd.f32 %v794_v28, %v2038_v16  ;;  %v847_v30 = vpop.f32.mrb[22].mxu1  ;;  %1058 = vmatprep.subr.bf16.mxu1 %v995_v20  ;;  %v796_v31 = vpop.f32.mrb[23].mxu0  ;;  %1018 = vmatpush1.bf16.msra.mxu0 %v992_v14  ;;  %v974_v35 = vmax.f32 %v791_v22, 0.0 }
 0x20e   :  { %v848_v32 = vadd.f32 %v847_v30, %v2038_v16  ;;  %v797_v33 = vadd.f32 %v796_v31, %v2038_v16  ;;  %v849_v34 = vpop.f32.mrb[23].mxu1  ;;  %1059 = vmatpush1.bf16.msra.mxu1 %v994_v17  ;;  %v976_v38 = vmax.f32 %v844_v25, 0.0  ;;  %v975_v39 = vmax.f32 %v793_v26, 0.0 }
 0x20f   :  { %v982_v36 = vmax.f32 %v795_v57, 0.0  ;;  %v850_v37 = vadd.f32 %v849_v34, %v2038_v16  ;;  %v977_v43 = vmax.f32 %v846_v29, 0.0 }
 0x210   :  { %v984_v40 = vmax.f32 %v848_v32, 0.0  ;;  %v983_v41 = vmax.f32 %v797_v33, 0.0 }
 0x211   :  { %v1000_v44 = vpack.c.bf16 %v982_v36, %v974_v35  ;;  %v985_v55 = vmax.f32 %v850_v37, 0.0 }
 0x212   :  { %v1002_v46 = vpack.c.bf16 %v984_v40, %v976_v38  ;;  %v1001_v47 = vpack.c.bf16 %v983_v41, %v975_v39 }
 0x213   :  { %v1003_v48 = vpack.c.bf16 %v985_v55, %v977_v43 }
 0x214   :  { %1019 = vmatprep.subr.bf16.mxu0 %v1001_v47 }
 0x215   :  { %1060 = vmatprep.subr.bf16.mxu1 %v1003_v48  ;;  %1020 = vmatpush1.bf16.msra.mxu0 %v1000_v44 }
 0x216   :  { %1061 = vmatpush1.bf16.msra.mxu1 %v1002_v46 }
 0x218   :  { %1231 = vmatmul.mubr.msk.bf16.vlgmr.msra.gmra.mrb[32].mxu0 %vm739_vm1, %v2051_v49 }
 0x219   :  { %1232 = vmatmul.mubr.msk.bf16.vlgmr.msra.gmra.mrb[32].mxu1 %vm739_vm1, %v2051_v49  ;;  %1131 = vmatprep.mubr.bf16.mxu0 %v1375_v42 }
 0x21a   :  { %1172 = vmatprep.mubr.bf16.mxu1 %v1375_v42 }
 0x242   :  { %v886_v50 = vpop.f32.mrb[24].mxu0 }
 0x243   :  { %v887_v52 = vadd.f32 %v886_v50, %v2024_v21  ;;  %v939_v53 = vpop.f32.mrb[24].mxu1  ;;  %v888_v56 = vpop.f32.mrb[25].mxu0 }
 0x244   :  { %v940_v58 = vadd.f32 %v939_v53, %v2024_v21  ;;  %v889_v60 = vadd.f32 %v888_v56, %v2024_v21  ;;  %v941_v61 = vpop.f32.mrb[25].mxu1  ;;  %v890_v62 = vpop.f32.mrb[26].mxu0 }
 0x245   :  { %v942_v18 = vadd.f32 %v941_v61, %v2024_v21  ;;  %v891_v59 = vadd.f32 %v890_v62, %v2026_v51  ;;  %v943_v63 = vpop.f32.mrb[26].mxu1  ;;  %v892_v0 = vpop.f32.mrb[27].mxu0  ;;  %v962_v3 = vmax.f32 %v887_v52, 0.0 }
 0x246   :  { %v944_v1 = vadd.f32 %v943_v63, %v2026_v51  ;;  %v893_v42 = vadd.f32 %v892_v0, %v2026_v51  ;;  %v945_v2 = vpop.f32.mrb[27].mxu1  ;;  %v964_v6 = vmax.f32 %v940_v58, 0.0  ;;  %v963_v7 = vmax.f32 %v889_v60, 0.0 }
 0x247   :  { %v970_v4 = vmax.f32 %v891_v59, 0.0  ;;  %v946_v5 = vadd.f32 %v945_v2, %v2026_v51  ;;  %v965_v10 = vmax.f32 %v942_v18, 0.0 }
 0x248   :  { %v972_v8 = vmax.f32 %v944_v1, 0.0  ;;  %v971_v9 = vmax.f32 %v893_v42, 0.0 }
 0x249   :  { %v996_v11 = vpack.c.bf16 %v970_v4, %v962_v3  ;;  %v973_v21 = vmax.f32 %v946_v5, 0.0 }
 0x24a   :  { %v998_v13 = vpack.c.bf16 %v972_v8, %v964_v6  ;;  %v997_v14 = vpack.c.bf16 %v971_v9, %v963_v7  ;;  %v896_v15 = vpop.f32.mrb[28].mxu0 }
 0x24b   :  { %v999_v17 = vpack.c.bf16 %v973_v21, %v965_v10  ;;  %v897_v19 = vadd.f32 %v896_v15, %v2036_v12  ;;  %v949_v54 = vpop.f32.mrb[28].mxu1  ;;  %v898_v20 = vpop.f32.mrb[29].mxu0 }
 0x24c   :  { %v950_v22 = vadd.f32 %v949_v54, %v2036_v12  ;;  %v899_v23 = vadd.f32 %v898_v20, %v2036_v12  ;;  %v951_v51 = vpop.f32.mrb[29].mxu1  ;;  %v900_v24 = vpop.f32.mrb[30].mxu0  ;;  %1099 = vmatprep.subr.bf16.mxu0 %v997_v14 }
 0x24d   :  { %v952_v25 = vadd.f32 %v951_v51, %v2036_v12  ;;  %v901_v26 = vadd.f32 %v900_v24, %v2038_v16  ;;  %v953_v27 = vpop.f32.mrb[30].mxu1  ;;  %1140 = vmatprep.subr.bf16.mxu1 %v999_v17  ;;  %v902_v28 = vpop.f32.mrb[31].mxu0  ;;  %1100 = vmatpush1.bf16.msra.mxu0 %v996_v11  ;;  %v978_v31 = vmax.f32 %v897_v19, 0.0 }
 0x24e   :  { %v954_v29 = vadd.f32 %v953_v27, %v2038_v16  ;;  %v903_v57 = vadd.f32 %v902_v28, %v2038_v16  ;;  %v955_v30 = vpop.f32.mrb[31].mxu1  ;;  %1141 = vmatpush1.bf16.msra.mxu1 %v998_v13  ;;  %v980_v34 = vmax.f32 %v950_v22, 0.0  ;;  %v979_v35 = vmax.f32 %v899_v23, 0.0 }
 0x24f   :  { %v986_v32 = vmax.f32 %v901_v26, 0.0  ;;  %v956_v33 = vadd.f32 %v955_v30, %v2038_v16  ;;  %v981_v37 = vmax.f32 %v952_v25, 0.0  ;;  %v1012_v16 = vpop.permute.xlu0 %1011 }
 0x250   :  { %v988_v36 = vmax.f32 %v954_v29, 0.0  ;;  %v987_v12 = vmax.f32 %v903_v57, 0.0 }
 0x251   :  { %v1004_v38 = vpack.c.bf16 %v986_v32, %v978_v31  ;;  %v989_v39 = vmax.f32 %v956_v33, 0.0 }
 0x252   :  { %v1006_v40 = vpack.c.bf16 %v988_v36, %v980_v34  ;;  %v1005_v41 = vpack.c.bf16 %v987_v12, %v979_v35 }
 0x253   :  { %v1007_v43 = vpack.c.bf16 %v989_v39, %v981_v37 }
 0x254   :  { %1101 = vmatprep.subr.bf16.mxu0 %v1005_v41 }
 0x255   :  { %1142 = vmatprep.subr.bf16.mxu1 %v1007_v43  ;;  %1102 = vmatpush1.bf16.msra.mxu0 %v1004_v38 }
 0x256   :  { %1143 = vmatpush1.bf16.msra.mxu1 %v1006_v40 }
 0x258   :  { %1233 = vmatmul.mubr.msk.bf16.vlgmr.msra.gmra.mrb[36].mxu0 %vm739_vm1, %v2051_v49 }
 0x259   :  { %1234 = vmatmul.mubr.msk.bf16.vlgmr.msra.gmra.mrb[36].mxu1 %vm739_vm1, %v2051_v49 }
 0x2eb   :  { %v1051_v44 = vpop.f32.mrb[32].mxu0 }
 0x2ec   :  { %v1052_v55 = vadd.f32 %v1051_v44, %v1012_v16  ;;  %v1092_v45 = vpop.f32.mrb[32].mxu1  ;;  %v1053_v46 = vpop.f32.mrb[33].mxu0 }
 0x2ed   :  { %v1093_v47 = vadd.f32 %v1092_v45, %v1012_v16  ;;  %v1054_v48 = vadd.f32 %v1053_v46, %v1012_v16  ;;  %v1094_v50 = vpop.f32.mrb[33].mxu1  ;;  %v1055_v52 = vpop.f32.mrb[34].mxu0 }
 0x2ee   :  { %v1095_v53 = vadd.f32 %v1094_v50, %v1012_v16  ;;  %v1096_v56 = vpop.f32.mrb[34].mxu1  ;;  %v1056_v58 = vpop.f32.mrb[35].mxu0 }
 0x2ef   :  { %v1189_v60 = vcombine.low %v1052_v55, %v1054_v48  ;;  %v1097_v61 = vpop.f32.mrb[35].mxu1 }
 0x2f0   :  { %v1190_v62 = vcombine.low %v1093_v47, %v1095_v53 }
 0x2f1   :  { %1197 = vst [vmem:[#allocation2] sm:$0x77] %v1189_v60 }
 0x2f2   :  { %1198 = vst [vmem:[#allocation2 + $0x8] sm:$0x77] %v1190_v62 }
 0x32b   :  { %v1133_v18 = vpop.f32.mrb[36].mxu0 }
 0x32c   :  { %v1134_v59 = vadd.f32 %v1133_v18, %v1012_v16  ;;  %v1174_v49 = vpop.f32.mrb[36].mxu1  ;;  %v1135_v63 = vpop.f32.mrb[37].mxu0 }
 0x32d   :  { %v1175_v0 = vadd.f32 %v1174_v49, %v1012_v16  ;;  %v1136_v1 = vadd.f32 %v1135_v63, %v1012_v16  ;;  %v1176_v42 = vpop.f32.mrb[37].mxu1  ;;  %v1137_v2 = vpop.f32.mrb[38].mxu0 }
 0x32e   :  { %v1177_v3 = vadd.f32 %v1176_v42, %v1012_v16  ;;  %v1178_v4 = vpop.f32.mrb[38].mxu1  ;;  %v1138_v5 = vpop.f32.mrb[39].mxu0 }
 0x32f   :  { %v1191_v6 = vcombine.low %v1134_v59, %v1136_v1  ;;  %v1179_v7 = vpop.f32.mrb[39].mxu1 }
 0x330   :  { %v1192_v8 = vcombine.low %v1175_v0, %v1177_v3 }
 0x331   :  { %1199 = vst [vmem:[#allocation2 + $0x10] sm:$0x77] %v1191_v6 }
 0x332   :  { %1200 = vst [vmem:[#allocation2 + $0x18] sm:$0x77] %v1192_v8 }
 0x333   :  { %1362 = shalt.err (!%p1359_p4)
}
 0x334   :  { %s1363_s21 = scalar_lea.hbm %s2098_s7, 512 }
 0x335   :  { %p1364_p5 = scmp.ne.s32.totalorder %s2098_s7, %s1363_s21  ;;  %p1367_p6 = scmp.lt.u32.totalorder %s1363_s21, %s2098_s7 }
 0x337   :  { %p1369_p7 = pnand %p1367_p6, %p1364_p5 }
 0x339   :  { %1372 = shalt.err (!%p1369_p7)
}
 0x33a   :  { %1210 = dma.vmem_to_hbm [thread:$0]  %s1208_s17, 512, %s2098_s7, [#allocation3]  }
 0x33b   :  { %1373 = dma.done.wait [#allocation3], 512  }
 0x33c   :  { %1374 = vsyncadd [#allocation3], 4294966784 }
 0x33d   :  { %1214 = vsyncpa [#allocation3], 1 }

</bundles_post_ra>
